<compile_context>
chip_gen: v5e
topology: v5e:2x2
jax: 0.10.0
libtpu: 0.0.40
codegen_flags: <defaults>
</compile_context>

<pallas_src>
import functools
import math

import jax
import jax.numpy as jnp
import numpy as np
from jax.experimental import pallas as pl
from jax.experimental.pallas import tpu as pltpu


def attention_kernel(x_ref, pos_ref, w_ref, sel_ref, out_ref, *, n_heads, residual):
    """One batch-block of the forward pass; whole working set resident in VMEM."""
    B, T, D = x_ref.shape
    H = n_heads

    # Position-aware inputs (f32).  (B,T,D)->(B*T,D) is layout-free (T == 8).
    temporal3 = x_ref[...] + pos_ref[...][None]                  # (B, T, D)
    temporal = temporal3.reshape(B * T, D)
    t_bf = temporal.astype(jnp.bfloat16)

    # Fused Q|K|V projection: one MXU push, bf16 operands, f32 accumulation.
    # The 1/sqrt(T) score scale is pre-folded into the Q columns of w_ref.
    qkv = jnp.dot(t_bf, w_ref[:, 0:3 * D],
                  preferred_element_type=jnp.float32)            # (B*T, 3D)
    q = qkv[:, 0:D]
    k = qkv[:, D:2 * D]
    v = qkv[:, 2 * D:3 * D]

    # Rows 0..T-2 are fully masked in the reference -> uniform softmax ->
    # output = per-batch column mean of v (heads never mix columns).
    v3 = v.reshape(B, T, D)
    mean_v = jnp.mean(v3, axis=1)                                # (B, D)

    # Last row: per-head scores for ALL heads via the block-diagonal selector
    # (hmap[d, h] = 1 iff column d belongs to head h); 0/1 is exact in bf16.
    hmap = sel_ref[0:D, 0:H]                                     # (D, H) bf16
    hmap_t = sel_ref[D:D + H, 0:D]                               # (H, D) bf16
    q_last = q.reshape(B, T, D)[:, T - 1, :]                     # (B, D), pre-scaled
    prod = q_last[:, None, :] * k.reshape(B, T, D)               # (B, T, D) f32
    s = jnp.dot(prod.reshape(B * T, D).astype(jnp.bfloat16), hmap,
                preferred_element_type=jnp.float32).reshape(B, T, H)
    s = s - jnp.max(s, axis=1, keepdims=True)
    p = jnp.exp(s)
    p = p * pl.reciprocal(jnp.sum(p, axis=1, keepdims=True), approx=True)
    # Expand per-head probs back over each head's columns, reduce over T.
    p_full = jnp.dot(p.reshape(B * T, H).astype(jnp.bfloat16), hmap_t,
                     preferred_element_type=jnp.float32)         # (B*T, D)
    last_row = jnp.sum((p_full * v).reshape(B, T, D), axis=1)    # (B, D)

    # Assemble attention output: rows 0..T-2 = mean_v, row T-1 = last_row.
    is_last = jax.lax.broadcasted_iota(jnp.int32, (B, T, D), 1) == (T - 1)
    attn = jnp.where(is_last, last_row[:, None, :], mean_v[:, None, :])
    attn = attn.reshape(B * T, D)

    # Feed-forward: relu(attn @ W_lin^T) + attn, then optional residual.
    ff = jnp.maximum(
        jnp.dot(attn.astype(jnp.bfloat16), w_ref[:, 3 * D:4 * D],
                preferred_element_type=jnp.float32), 0.0) + attn
    out = ff + temporal if residual else ff
    out_ref[...] = out.reshape(B, T, D).astype(out_ref.dtype)


def init_attention_constants(pos_emb, wq, wk, wv, wlin, *, n_heads, num_time_slots):
    """One-time (module init) prep: packed, pre-scaled, pre-cast constants.

    Hoisting this out of the per-call path removes 4-5 per-forward XLA ops
    (concat / transpose / tile / asarray), which at these shapes cost as much
    as the kernel itself.
    """
    D = wq.shape[0]
    H = n_heads
    hd = D // H
    scale = 1.0 / math.sqrt(num_time_slots)
    # One lane-dense (D, 4D) == (32, 128) bf16 slab: [wq/sqrt(T) | wk | wv | wlin^T].
    w_slab = jnp.concatenate(
        [jnp.asarray(wq) * scale, jnp.asarray(wk), jnp.asarray(wv),
         jnp.asarray(wlin).T], axis=1).astype(jnp.bfloat16)
    # Head selector + its transpose packed into one (D+H, D) constant.
    hmap = np.kron(np.eye(H, dtype=np.float32),
                   np.ones((hd, 1), dtype=np.float32))           # (D, H)
    sel_np = np.zeros((D + H, D), dtype=np.float32)
    sel_np[:D, :H] = hmap
    sel_np[D:, :] = hmap.T
    sel = jnp.asarray(sel_np, dtype=jnp.bfloat16)
    pos = jnp.asarray(pos_emb, jnp.float32)                      # (T, D), added in f32
    return w_slab, sel, pos


@functools.partial(jax.jit, static_argnames=("n_heads", "residual", "batch_block"))
def attention_forward(x, pos, w_slab, sel, *, n_heads, residual, batch_block=64):
    B, T, D = x.shape
    H = n_heads
    kernel = functools.partial(attention_kernel, n_heads=H, residual=residual)
    out_shape = jax.ShapeDtypeStruct((B, T, D), x.dtype)

    if B <= batch_block:
        # Toy batches: single gridless call; everything fits in VMEM, no
        # per-step grid overhead.
        return pl.pallas_call(kernel, out_shape=out_shape)(x, pos, w_slab, sel)

    # Larger batches: amortize launch/DMA fixed cost over a batch-block grid;
    # "parallel" lets v7x's second TensorCore take half the blocks.
    nb = pl.cdiv(B, batch_block)
    return pl.pallas_call(
        kernel,
        out_shape=out_shape,
        grid=(nb,),
        in_specs=[
            pl.BlockSpec((batch_block, T, D), lambda i: (i, 0, 0)),
            pl.BlockSpec((T, D), lambda i: (0, 0)),
            pl.BlockSpec((D, 4 * D), lambda i: (0, 0)),
            pl.BlockSpec((D + H, D), lambda i: (0, 0)),
        ],
        out_specs=pl.BlockSpec((batch_block, T, D), lambda i: (i, 0, 0)),
        compiler_params=pltpu.CompilerParams(dimension_semantics=("parallel",)),
    )(x, pos, w_slab, sel)


def reference_jax(x, pos_emb, wq, wk, wv, wlin, *, n_heads, residual):
    """Pure-JAX f32 transcription of the PyTorch forward (eval mode)."""
    B, T, D = x.shape
    temporal = x + pos_emb[None]                                 # (B, T, D)
    q = jnp.einsum("btd,de->bte", temporal, wq)
    k = jnp.einsum("btd,de->bte", temporal, wk)
    v = jnp.einsum("btd,de->bte", temporal, wv)
    q_ = jnp.concatenate(jnp.split(q, n_heads, axis=2), axis=0)
    k_ = jnp.concatenate(jnp.split(k, n_heads, axis=2), axis=0)
    v_ = jnp.concatenate(jnp.split(v, n_heads, axis=2), axis=0)
    s = jnp.matmul(q_, jnp.transpose(k_, (0, 2, 1))) / (T ** 0.5)
    tril = jnp.concatenate([jnp.zeros((T - 1, T)), jnp.ones((1, T))], axis=0)
    masks = jnp.broadcast_to(tril, s.shape)
    s = jnp.where(masks == 0, jnp.float32(-2.0 ** 32 + 1), s)
    p = jax.nn.softmax(s, axis=2)
    o = jnp.matmul(p, v_)
    o = jnp.concatenate(jnp.split(o, n_heads, axis=0), axis=2)   # (B, T, D)
    ff = jax.nn.relu(o @ wlin.T) + o
    return ff + temporal if residual else ff


def xavier_uniform(key, shape):
    fan_in, fan_out = shape[-2], shape[-1]
    bound = math.sqrt(6.0 / (fan_in + fan_out))
    return jax.random.uniform(key, shape, jnp.float32, -bound, bound)


if __name__ == "__main__":
    # Small shapes consistent with the module.
    B, T, D, H = 2, 8, 32, 4          # batch, num_time_slots, input_dim, n_heads
    residual = True

    key = jax.random.PRNGKey(0)
    kx, kp, kq, kk, kv, kl, kx2 = jax.random.split(key, 7)

    x = jax.random.normal(kx, (B, T, D), jnp.float32)
    pos_emb = xavier_uniform(kp, (T, D))
    wq = xavier_uniform(kq, (D, D))
    wk = xavier_uniform(kk, (D, D))
    wv = xavier_uniform(kv, (D, D))
    wlin = xavier_uniform(kl, (D, D))   # nn.Linear(D, D, bias=False) weight (out, in)

    # Module init: build the packed constants exactly once.
    w_slab, sel, pos = init_attention_constants(
        pos_emb, wq, wk, wv, wlin, n_heads=H, num_time_slots=T)

    # --- gridless path (toy batch) -----------------------------------------
    out = attention_forward(x, pos, w_slab, sel, n_heads=H, residual=residual)
    out = jax.block_until_ready(out)
    ref = reference_jax(x, pos_emb, wq, wk, wv, wlin, n_heads=H, residual=residual)
    # bf16 MXU operands (f32 accumulation) => mixed-precision tolerance.
    np.testing.assert_allclose(np.asarray(out), np.asarray(ref), rtol=2e-2, atol=2e-2)

    # --- batch-blocked grid path (amortizes launch/DMA; v7x 2nd TC) ---------
    B2 = 16
    x2 = jax.random.normal(kx2, (B2, T, D), jnp.float32)
    out2 = attention_forward(x2, pos, w_slab, sel, n_heads=H, residual=residual,
                             batch_block=8)
    out2 = jax.block_until_ready(out2)
    ref2 = reference_jax(x2, pos_emb, wq, wk, wv, wlin, n_heads=H, residual=residual)
    np.testing.assert_allclose(np.asarray(out2), np.asarray(ref2), rtol=2e-2, atol=2e-2)

    print("KERNEL_OK")
</pallas_src>

<mosaic_0001>
module attributes {stable_mosaic.version = 11 : i64} {
  func.func @attention_kernel(%arg0: memref<2x8x32xf32, #tpu.memory_space<vmem>>, %arg1: memref<8x32xf32, #tpu.memory_space<vmem>>, %arg2: memref<32x128xbf16, #tpu.memory_space<vmem>>, %arg3: memref<36x32xbf16, #tpu.memory_space<vmem>>, %arg4: memref<2x8x32xf32, #tpu.memory_space<vmem>>) attributes {dimension_semantics = [], scalar_prefetch = 0 : i64, scratch_operands = 0 : i64, tpu.core_type = #tpu.core_type<tc>} {
    %c0 = arith.constant 0 : index
    %c0_0 = arith.constant 0 : index
    %c0_1 = arith.constant 0 : index
    %0 = vector.load %arg0[%c0, %c0_0, %c0_1] : memref<2x8x32xf32, #tpu.memory_space<vmem>>, vector<2x8x32xf32>
    %c0_2 = arith.constant 0 : index
    %c0_3 = arith.constant 0 : index
    %1 = vector.load %arg1[%c0_2, %c0_3] : memref<8x32xf32, #tpu.memory_space<vmem>>, vector<8x32xf32>
    %2 = vector.shape_cast %1 : vector<8x32xf32> to vector<1x8x32xf32>
    %3 = vector.broadcast %2 : vector<1x8x32xf32> to vector<2x8x32xf32>
    %4 = arith.addf %0, %3 : vector<2x8x32xf32>
    %5 = vector.shape_cast %4 : vector<2x8x32xf32> to vector<16x32xf32>
    %6 = arith.truncf %5 : vector<16x32xf32> to vector<16x32xbf16>
    %c0_4 = arith.constant 0 : index
    %c0_5 = arith.constant 0 : index
    %7 = vector.load %arg2[%c0_4, %c0_5] : memref<32x128xbf16, #tpu.memory_space<vmem>>, vector<32x96xbf16>
    %cst = arith.constant dense<0.000000e+00> : vector<16x96xf32>
    %8 = tpu.matmul %6, %7, %cst {dimension_numbers = #tpu.dot_dimension_numbers<[1], [0], [0], [1], [0, 0, 1, 1], [], []>} : vector<16x32xbf16>, vector<32x96xbf16>, vector<16x96xf32> -> vector<16x96xf32>
    %9 = vector.extract_strided_slice %8 {offsets = [0, 0], sizes = [16, 32], strides = [1, 1]} : vector<16x96xf32> to vector<16x32xf32>
    %10 = vector.extract_strided_slice %8 {offsets = [0, 32], sizes = [16, 32], strides = [1, 1]} : vector<16x96xf32> to vector<16x32xf32>
    %11 = vector.extract_strided_slice %8 {offsets = [0, 64], sizes = [16, 32], strides = [1, 1]} : vector<16x96xf32> to vector<16x32xf32>
    %12 = vector.shape_cast %11 : vector<16x32xf32> to vector<2x8x32xf32>
    %cst_6 = arith.constant dense<0.000000e+00> : vector<2x32xf32>
    %13 = vector.multi_reduction <add>, %12, %cst_6 [1] : vector<2x8x32xf32> to vector<2x32xf32>
    %cst_7 = arith.constant 8.000000e+00 : f32
    %14 = vector.broadcast %cst_7 : f32 to vector<2x32xf32>
    %15 = arith.divf %13, %14 : vector<2x32xf32>
    %c0_8 = arith.constant 0 : index
    %c0_9 = arith.constant 0 : index
    %16 = vector.load %arg3[%c0_8, %c0_9] : memref<36x32xbf16, #tpu.memory_space<vmem>>, vector<32x4xbf16>
    %c32 = arith.constant 32 : index
    %c0_10 = arith.constant 0 : index
    %17 = vector.load %arg3[%c32, %c0_10] : memref<36x32xbf16, #tpu.memory_space<vmem>>, vector<4x32xbf16>
    %18 = vector.shape_cast %9 : vector<16x32xf32> to vector<2x8x32xf32>
    %19 = vector.extract_strided_slice %18 {offsets = [0, 7, 0], sizes = [2, 1, 32], strides = [1, 1, 1]} : vector<2x8x32xf32> to vector<2x1x32xf32>
    %20 = vector.shape_cast %19 : vector<2x1x32xf32> to vector<2x32xf32>
    %21 = vector.shape_cast %20 : vector<2x32xf32> to vector<2x1x32xf32>
    %22 = vector.shape_cast %10 : vector<16x32xf32> to vector<2x8x32xf32>
    %23 = vector.broadcast %21 : vector<2x1x32xf32> to vector<2x8x32xf32>
    %24 = arith.mulf %23, %22 : vector<2x8x32xf32>
    %25 = vector.shape_cast %24 : vector<2x8x32xf32> to vector<16x32xf32>
    %26 = arith.truncf %25 : vector<16x32xf32> to vector<16x32xbf16>
    %cst_11 = arith.constant dense<0.000000e+00> : vector<16x4xf32>
    %27 = tpu.matmul %26, %16, %cst_11 {dimension_numbers = #tpu.dot_dimension_numbers<[1], [0], [0], [1], [0, 0, 1, 1], [], []>} : vector<16x32xbf16>, vector<32x4xbf16>, vector<16x4xf32> -> vector<16x4xf32>
    %28 = vector.shape_cast %27 : vector<16x4xf32> to vector<2x8x4xf32>
    %cst_12 = arith.constant dense<0xFF800000> : vector<2x4xf32>
    %29 = vector.multi_reduction <maximumf>, %28, %cst_12 [1] : vector<2x8x4xf32> to vector<2x4xf32>
    %30 = vector.shape_cast %29 : vector<2x4xf32> to vector<2x1x4xf32>
    %31 = vector.broadcast %30 : vector<2x1x4xf32> to vector<2x8x4xf32>
    %32 = arith.subf %28, %31 : vector<2x8x4xf32>
    %33 = math.exp %32 : vector<2x8x4xf32>
    %cst_13 = arith.constant dense<0.000000e+00> : vector<2x4xf32>
    %34 = vector.multi_reduction <add>, %33, %cst_13 [1] : vector<2x8x4xf32> to vector<2x4xf32>
    %35 = vector.shape_cast %34 : vector<2x4xf32> to vector<2x1x4xf32>
    %36 = tpu.reciprocal %35 {approx = true} : vector<2x1x4xf32> -> vector<2x1x4xf32>
    %37 = vector.broadcast %36 : vector<2x1x4xf32> to vector<2x8x4xf32>
    %38 = arith.mulf %33, %37 : vector<2x8x4xf32>
    %39 = vector.shape_cast %38 : vector<2x8x4xf32> to vector<16x4xf32>
    %40 = arith.truncf %39 : vector<16x4xf32> to vector<16x4xbf16>
    %cst_14 = arith.constant dense<0.000000e+00> : vector<16x32xf32>
    %41 = tpu.matmul %40, %17, %cst_14 {dimension_numbers = #tpu.dot_dimension_numbers<[1], [0], [0], [1], [0, 0, 1, 1], [], []>} : vector<16x4xbf16>, vector<4x32xbf16>, vector<16x32xf32> -> vector<16x32xf32>
    %42 = arith.mulf %41, %11 : vector<16x32xf32>
    %43 = vector.shape_cast %42 : vector<16x32xf32> to vector<2x8x32xf32>
    %cst_15 = arith.constant dense<0.000000e+00> : vector<2x32xf32>
    %44 = vector.multi_reduction <add>, %43, %cst_15 [1] : vector<2x8x32xf32> to vector<2x32xf32>
    %45 = tpu.iota {dimensions = array<i32: 1>} : vector<2x8x32xi32>
    %c7_i32 = arith.constant 7 : i32
    %46 = vector.broadcast %c7_i32 : i32 to vector<2x8x32xi32>
    %47 = arith.cmpi eq, %45, %46 : vector<2x8x32xi32>
    %48 = vector.shape_cast %44 : vector<2x32xf32> to vector<2x1x32xf32>
    %49 = vector.shape_cast %15 : vector<2x32xf32> to vector<2x1x32xf32>
    %50 = vector.shape_cast %48 : vector<2x1x32xf32> to vector<2x1x32xf32>
    %51 = vector.broadcast %50 : vector<2x1x32xf32> to vector<2x8x32xf32>
    %52 = vector.shape_cast %49 : vector<2x1x32xf32> to vector<2x1x32xf32>
    %53 = vector.broadcast %52 : vector<2x1x32xf32> to vector<2x8x32xf32>
    %54 = arith.select %47, %51, %53 : vector<2x8x32xi1>, vector<2x8x32xf32>
    %55 = vector.shape_cast %54 : vector<2x8x32xf32> to vector<16x32xf32>
    %56 = arith.truncf %55 : vector<16x32xf32> to vector<16x32xbf16>
    %c0_16 = arith.constant 0 : index
    %c96 = arith.constant 96 : index
    %57 = vector.load %arg2[%c0_16, %c96] : memref<32x128xbf16, #tpu.memory_space<vmem>>, vector<32x32xbf16>
    %cst_17 = arith.constant dense<0.000000e+00> : vector<16x32xf32>
    %58 = tpu.matmul %56, %57, %cst_17 {dimension_numbers = #tpu.dot_dimension_numbers<[1], [0], [0], [1], [0, 0, 1, 1], [], []>} : vector<16x32xbf16>, vector<32x32xbf16>, vector<16x32xf32> -> vector<16x32xf32>
    %cst_18 = arith.constant 0.000000e+00 : f32
    %59 = vector.broadcast %cst_18 : f32 to vector<16x32xf32>
    %60 = arith.maximumf %58, %59 : vector<16x32xf32>
    %61 = arith.addf %60, %55 : vector<16x32xf32>
    %62 = arith.addf %61, %5 : vector<16x32xf32>
    %63 = vector.shape_cast %62 : vector<16x32xf32> to vector<2x8x32xf32>
    %c0_19 = arith.constant 0 : index
    %c0_20 = arith.constant 0 : index
    %c0_21 = arith.constant 0 : index
    %64 = vector.load %arg4[%c0_19, %c0_20, %c0_21] : memref<2x8x32xf32, #tpu.memory_space<vmem>>, vector<2x8x32xf32>
    tpu.vector_store %arg4[%c0_19, %c0_20, %c0_21], %63 {strides = array<i32>} : memref<2x8x32xf32, #tpu.memory_space<vmem>>, vector<2x8x32xf32>,
    return
  }
}

</mosaic_0001>

<bundles_post_ra>
// kernel: attention_forward.1
= control target key start
LH: loop header
LB: loop body
LE: loop exit
PB: predicated region body
PF: predicated region fallthrough
CT: control target
= control target key end

     0   :  { %9 = vsyncpa [#allocation3], 0  ;;  %s469_s0 = inlined_call_operand.vmem [shape: f32[2,8,32], index: 0, kind: input, shape index: {}]   ;;  %s470_s1 = inlined_call_operand.hbm [shape: f32[8,32], index: 1, kind: input, shape index: {}]   ;;  %s471_s2 = inlined_call_operand.vmem [shape: bf16[32,128], index: 2, kind: input, shape index: {}]   ;;  %s472_s3 = inlined_call_operand.vmem [shape: bf16[36,32], index: 3, kind: input, shape index: {}]   ;;  %s473_s4 = inlined_call_operand.hbm [shape: f32[2,8,32], index: 4, kind: output, shape index: {}]  }
   0x1   :  { %10 = vsyncpa [#allocation4], 0  ;;  %s18_s17 = sshll.u32 %s470_s1, 4  ;;  %s385_s18 = smov [#allocation2]   ;;  %s19_s17 = int_to_ptr.hbm [resolvable:$true] %s18_s17 }
   0x2   :  { %s20_s19 = sshll.u32 %s385_s18, 4  ;;  %s21_s19 = int_to_ptr.vmem [resolvable:$true] %s20_s19 }
   0x3   :  { %23 = dma.hbm_to_vmem [thread:$0]  %s19_s17, 128, %s21_s19, [#allocation3]  }
   0x4   :  { %381 = dma.done.wait [#allocation3], 128  }
   0x5   :  { %382 = vsyncadd [#allocation3], 4294967168  ;;  %v312_v0 = vld [vmem:[%s471_s2 + $0x8] sm:$0xff]  ;;  %v33_v1 = vld [vmem:[%s469_s0] sm:$0xff]  ;;  %vm55_vm0 = vcmask 261120   ;;  %s386_s27 = smov 32  }
   0x6   :  { %v34_v2 = vld [vmem:[%s469_s0 + $0x8] sm:$0xff]  ;;  %v35_v3 = vld [vmem:[#allocation2] sm:$0xff]  ;;  %65 = vmatpush.bf16.msra.mxu0 %v312_v0  ;;  %243 = vrot.lane.b32.xlu2 %v312_v0, %s386_s27  ;;  %v387_v8 = vmov 8.0   ;;  %vm73_vm1 = vcmask 785920   ;;  %s388_s0 = smov 64   ;;  %vm144_vm3 = vcmask 31744  }
   0x7   :  { %v311_v4 = vld [vmem:[%s471_s2] sm:$0xff]  ;;  %v433_v5 = vadd.f32 %v35_v3, %v33_v1  ;;  %v435_v6 = vadd.f32 %v35_v3, %v34_v2  ;;  %323 = vrcp.f32 %v387_v8  ;;  %s389_s2 = smov 96   ;;  %v314_v34 = vld [vmem:[%s472_s3 + $0x8] sm:$0xff]  ;;  %v101_v53 = vld [vmem:[%s472_s3 + $0x10] sm:$0x3]  ;;  %vm187_vm4 = vcmask 1041408  }
   0x8   :  { %136 = vmatpush.bf16.msra.mxu1 %v314_v34  ;;  %v313_v35 = vld [vmem:[%s472_s3] sm:$0xff]  ;;  %v189_v54 = vsel %vm187_vm4, %v101_v53, 0  ;;  %s390_s3 = smov [#allocation5]   ;;  %s278_s11 = sshll.u32 %s473_s4, 4  ;;  %s279_s11 = int_to_ptr.hbm [resolvable:$true] %s278_s11 }
   0x9   :  { %v38_v7 = vpack.c.bf16 %v435_v6, %v433_v5  ;;  %198 = vmatpush.bf16.msra.mxu2 %v189_v54  ;;  %s276_s8 = sshll.u32 %s390_s3, 4  ;;  %s391_s12 = smov 128   ;;  %s277_s8 = int_to_ptr.vmem [resolvable:$true] %s276_s8 }
   0xa   :  { %66 = vmatpush.bf16.msra.mxu0 %v311_v4  ;;  %s392_s13 = smov 8  }
   0xc   :  { %137 = vmatpush.bf16.msra.mxu1 %v313_v35 }
   0xd   :  { %299 = vmatmul.msk.bf16.vlgmr.msra.gmra.mxu0 %vm55_vm0, %v38_v7  ;;  %v324_v9 = vpop.eup %323 }
   0xe   :  { %v89_v11 = vmul.f32 8.0, %v324_v9  ;;  %vm93_vm2 = vweird.f32 %v324_v9 }
  0x10   :  { %v90_v12 = vsub.f32 1.0, %v89_v11 }
  0x12   :  { %v91_v16 = vmul.f32 %v324_v9, %v90_v12 }
  0x14   :  { %v92_v19 = vadd.f32 %v324_v9, %v91_v16 }
  0x16   :  { %v94_v25 = vsel %vm93_vm2, %v324_v9, %v92_v19 }
  0x60   :  { %v244_v10 = vpop.permute.xlu2 %243 }
  0x61   :  { %256 = vmatpush.bf16.msra.mxu3 %v244_v10 }
  0x8a   :  { %v68_v13 = vpop.f32.mrf.mxu0 }
  0x8b   :  { %205 = vrot.lane.b32.xlu1 %v68_v13, %s388_s0  ;;  %106 = vrot.lane.b32.xlu0 %v68_v13, %s389_s2  ;;  %v74_v14 = vsel %vm73_vm1, %v68_v13, 0.0  ;;  %v102_v37 = vperm.slane %v68_v13, 7 }
  0x8c   :  { %v75_v15 = vrot.slane %v74_v14, 4 }
  0x8e   :  { %v76_v17 = vadd.f32 %v75_v15, %v74_v14 }
  0x90   :  { %v77_v18 = vrot.slane %v76_v17, 2 }
  0x92   :  { %v70_v20 = vpop.f32.mrf.mxu0  ;;  %v78_v21 = vadd.f32 %v77_v18, %v76_v17 }
  0x93   :  { %v81_v22 = vsel %vm73_vm1, %v70_v20, 0.0  ;;  %207 = vrot.lane.b32.xlu1 %v70_v20, %s388_s0  ;;  %108 = vrot.lane.b32.xlu0 %v70_v20, %s389_s2  ;;  %v103_v38 = vperm.slane %v70_v20, 7 }
  0x94   :  { %v82_v23 = vrot.slane %v81_v22, 4  ;;  %v79_v24 = vrot.slane %v78_v21, 1 }
  0x96   :  { %v83_v26 = vadd.f32 %v82_v23, %v81_v22  ;;  %v80_v27 = vadd.f32 %v79_v24, %v78_v21 }
  0x98   :  { %v84_v28 = vrot.slane %v83_v26, 2  ;;  %v95_v29 = vmul.f32 %v94_v25, %v80_v27 }
  0x9a   :  { %v85_v30 = vadd.f32 %v84_v28, %v83_v26  ;;  %232 = vrot.lane.b32.xlu2 %v95_v29, %s388_s0 }
  0x9b   :  { %241 = vrot.lane.b32.xlu1 %v311_v4, %s386_s27 }
  0x9c   :  { %v86_v31 = vrot.slane %v85_v30, 1 }
  0x9e   :  { %v87_v32 = vadd.f32 %v86_v31, %v85_v30 }
  0xa0   :  { %v96_v33 = vmul.f32 %v94_v25, %v87_v32 }
  0xa2   :  { %234 = vrot.lane.b32.xlu0 %v96_v33, %s388_s0 }
  0xfd   :  { %v107_v36 = vpop.permute.xlu0 %106  ;;  %v206_v24 = vpop.permute.xlu1 %205 }
  0xfe   :  { %v112_v40 = vmul.f32 %v107_v36, %v102_v37 }
 0x105   :  { %v109_v39 = vpop.permute.xlu0 %108  ;;  %v208_v25 = vpop.permute.xlu1 %207 }
 0x106   :  { %v113_v41 = vmul.f32 %v109_v39, %v103_v38  ;;  %v227_v38 = vlaneseq }
 0x108   :  { %v114_v42 = vpack.c.bf16 %v113_v41, %v112_v40 }
 0x10a   :  { %308 = vmatmul.msk.bf16.vlgmr.msra.gmra.mxu1 %vm55_vm0, %v114_v42  ;;  %v228_v42 = vshrl.u32 %v227_v38, 7 }
 0x10c   :  { %vm229_vm5 = vcmp.eq.s32.totalorder %v228_v42, 7 }
 0x10d   :  { %v242_v26 = vpop.permute.xlu1 %241 }
 0x10e   :  { %257 = vmatpush.bf16.msra.mxu3 %v242_v26 }
 0x187   :  { %v139_v43 = vpop.f32.mrf.mxu1 }
 0x188   :  { %v145_v44 = vsel %vm144_vm3, %v139_v43, -inf }
 0x189   :  { %v146_v45 = vrot.slane %v145_v44, 4 }
 0x18b   :  { %v147_v46 = vmax.f32 %v145_v44, %v146_v45 }
 0x18d   :  { %v148_v47 = vrot.slane %v147_v46, 2 }
 0x18f   :  { %v149_v48 = vmax.f32 %v147_v46, %v148_v47  ;;  %v141_v49 = vpop.f32.mrf.mxu1  ;;  %v233_v47 = vpop.permute.xlu2 %232 }
 0x190   :  { %v152_v50 = vsel %vm144_vm3, %v141_v49, -inf }
 0x191   :  { %v150_v51 = vrot.slane %v149_v48, 1  ;;  %v153_v52 = vrot.slane %v152_v50, 4 }
 0x193   :  { %v151_v55 = vmax.f32 %v149_v48, %v150_v51  ;;  %v154_v56 = vmax.f32 %v152_v50, %v153_v52  ;;  %v235_v48 = vpop.permute.xlu0 %234 }
 0x195   :  { %v159_v57 = vsub.f32 %v139_v43, %v151_v55  ;;  %v155_v58 = vrot.slane %v154_v56, 2 }
 0x197   :  { %v161_v59 = vmul.f32 1.442695, %v159_v57  ;;  %v156_v60 = vmax.f32 %v154_v56, %v155_v58 }
 0x199   :  { %325 = vpow2.f32 %v161_v59  ;;  %v157_v61 = vrot.slane %v156_v60, 1 }
 0x19b   :  { %v158_v62 = vmax.f32 %v156_v60, %v157_v61 }
 0x19d   :  { %v160_v63 = vsub.f32 %v141_v49, %v158_v62 }
 0x19f   :  { %v326_v0 = vpop.eup %325  ;;  %v163_v1 = vmul.f32 1.442695, %v160_v63 }
 0x1a0   :  { %v165_v2 = vsel %vm144_vm3, %v326_v0, 0.0 }
 0x1a1   :  { %v166_v3 = vrot.slane %v165_v2, 4  ;;  %327 = vpow2.f32 %v163_v1 }
 0x1a3   :  { %v167_v4 = vadd.f32 %v166_v3, %v165_v2 }
 0x1a5   :  { %v168_v7 = vrot.slane %v167_v4, 2 }
 0x1a7   :  { %v328_v8 = vpop.eup %327  ;;  %v169_v9 = vadd.f32 %v168_v7, %v167_v4 }
 0x1a8   :  { %v172_v10 = vsel %vm144_vm3, %v328_v8, 0.0 }
 0x1a9   :  { %v173_v11 = vrot.slane %v172_v10, 4  ;;  %v170_v12 = vrot.slane %v169_v9, 1 }
 0x1ab   :  { %v174_v13 = vadd.f32 %v173_v11, %v172_v10  ;;  %v171_v16 = vadd.f32 %v170_v12, %v169_v9 }
 0x1ad   :  { %v175_v14 = vrot.slane %v174_v13, 2  ;;  %329 = vrcp.f32 %v171_v16 }
 0x1af   :  { %v176_v15 = vadd.f32 %v175_v14, %v174_v13 }
 0x1b1   :  { %v177_v17 = vrot.slane %v176_v15, 1 }
 0x1b3   :  { %v178_v18 = vadd.f32 %v177_v17, %v176_v15  ;;  %v330_v19 = vpop.eup %329 }
 0x1b4   :  { %v181_v21 = vmul.f32 %v330_v19, %v326_v0 }
 0x1b5   :  { %331 = vrcp.f32 %v178_v18 }
 0x1bb   :  { %v332_v20 = vpop.eup %331 }
 0x1bc   :  { %v182_v22 = vmul.f32 %v332_v20, %v328_v8 }
 0x1be   :  { %v183_v23 = vpack.c.bf16 %v182_v22, %v181_v21 }
 0x1c0   :  { %309 = vmatmul.msk.bf16.vlgmr.msra.gmra.mxu2 %vm144_vm3, %v183_v23 }
 0x243   :  { %v200_v27 = vpop.f32.mrf.mxu2 }
 0x244   :  { %v211_v28 = vmul.f32 %v206_v24, %v200_v27 }
 0x246   :  { %v213_v29 = vsel %vm55_vm0, %v211_v28, 0.0 }
 0x247   :  { %v214_v30 = vrot.slane %v213_v29, 4 }
 0x249   :  { %v215_v31 = vadd.f32 %v214_v30, %v213_v29 }
 0x24b   :  { %v216_v32 = vrot.slane %v215_v31, 2  ;;  %v202_v33 = vpop.f32.mrf.mxu2 }
 0x24c   :  { %v212_v34 = vmul.f32 %v208_v25, %v202_v33 }
 0x24d   :  { %v217_v36 = vadd.f32 %v216_v32, %v215_v31 }
 0x24e   :  { %v220_v35 = vsel %vm55_vm0, %v212_v34, 0.0 }
 0x24f   :  { %v221_v37 = vrot.slane %v220_v35, 4  ;;  %v218_v40 = vrot.slane %v217_v36, 1 }
 0x251   :  { %v222_v39 = vadd.f32 %v221_v37, %v220_v35  ;;  %v219_v44 = vadd.f32 %v218_v40, %v217_v36 }
 0x253   :  { %v223_v41 = vrot.slane %v222_v39, 2  ;;  %v238_v49 = vsel %vm229_vm5, %v219_v44, %v233_v47 }
 0x255   :  { %v224_v43 = vadd.f32 %v223_v41, %v222_v39 }
 0x257   :  { %v225_v45 = vrot.slane %v224_v43, 1 }
 0x259   :  { %v226_v46 = vadd.f32 %v225_v45, %v224_v43 }
 0x25b   :  { %v239_v50 = vsel %vm229_vm5, %v226_v46, %v235_v48 }
 0x25c   :  { %v240_v51 = vpack.c.bf16 %v239_v50, %v238_v49 }
 0x25e   :  { %310 = vmatmul.msk.bf16.vlgmr.msra.gmra.mxu3 %vm55_vm0, %v240_v51 }
 0x2e1   :  { %v259_v52 = vpop.f32.mrf.mxu3 }
 0x2e2   :  { %v264_v53 = vmax.f32 %v259_v52, 0.0 }
 0x2e4   :  { %v266_v54 = vadd.f32 %v264_v53, %v238_v49 }
 0x2e6   :  { %v268_v55 = vadd.f32 %v266_v54, %v433_v5 }
 0x2e8   :  { %270 = vst.msk [vmem:[#allocation5] sm:$0xff] %vm55_vm0, %v268_v55 }
 0x2e9   :  { %v261_v56 = vpop.f32.mrf.mxu3 }
 0x2ea   :  { %v265_v57 = vmax.f32 %v261_v56, 0.0 }
 0x2ec   :  { %v267_v58 = vadd.f32 %v265_v57, %v239_v50 }
 0x2ee   :  { %v269_v59 = vadd.f32 %v267_v58, %v435_v6 }
 0x2f0   :  { %271 = vst.msk [vmem:[#allocation5 + $0x8] sm:$0xff] %vm55_vm0, %v269_v59 }
 0x2f1   :  { %284 = dma.vmem_to_hbm [thread:$0]  %s277_s8, 256, %s279_s11, [#allocation4], %s391_s12, %s391_s12, %s392_s13  }
 0x2f2   :  { %383 = dma.done.wait [#allocation4], 256  }
 0x2f3   :  { %384 = vsyncadd [#allocation4], 4294967040 }
 0x2f4   :  { %289 = vsyncpa [#allocation3], 1 }
 0x2f5   :  { %290 = vsyncpa [#allocation4], 1 }

</bundles_post_ra>
